<compile_context>
chip_gen: v7x
topology: tpu7x:2x2x1
jax: 0.10.0
libtpu: 0.0.40
codegen_flags: <defaults>
</compile_context>

<pallas_src>
import functools
import math

import jax
import jax.numpy as jnp
from jax import lax
from jax.experimental import pallas as pl
from jax.experimental.pallas import tpu as pltpu


def _qkv_kernel(x_ref, pos_ref, wqkv_ref, bqkv_ref, qn_ref, kn_ref,
                q_ref, k_ref, v_ref, *, n_heads: int, head_dim: int, eps: float):
    """Fused QKV projection + positional add + RMSNorm; head-major bf16 outputs."""
    D = n_heads * head_dim
    x = x_ref[0]                                     # (ts, D) bf16
    # One fused MXU matmul (N = 3D), bf16 operands, f32 accumulation.
    qkv = jnp.dot(x, wqkv_ref[...], preferred_element_type=jnp.float32) + bqkv_ref[...]
    pos = pos_ref[...]                               # (ts, D) f32

    q = qkv[:, 0 * D:1 * D] + pos
    k = qkv[:, 1 * D:2 * D] + pos
    v = qkv[:, 2 * D:3 * D]

    # RMSNorm over the hidden dim (f32 math), elementwise affine weight.
    q = q * lax.rsqrt(jnp.mean(q * q, axis=-1, keepdims=True) + eps) * qn_ref[...]
    k = k * lax.rsqrt(jnp.mean(k * k, axis=-1, keepdims=True) + eps) * kn_ref[...]
    # Fold the attention score scale into q while still in f32.
    q = q * (1.0 / math.sqrt(head_dim))

    # Head-major stores: (ts, D) -> (H, ts, hd).  One static slice-store per head,
    # once per s-tile -- kept out of the attention hot loop.
    for h in range(n_heads):
        lo = h * head_dim
        hi = lo + head_dim
        q_ref[0, h] = q[:, lo:hi].astype(q_ref.dtype)
        k_ref[0, h] = k[:, lo:hi].astype(k_ref.dtype)
        v_ref[0, h] = v[:, lo:hi].astype(v_ref.dtype)


def _flash_kernel(q_ref, k_ref, v_ref, wo_ref, bo_ref, out_ref,
                  m_sc, l_sc, acc_sc, o_sc, *, n_heads: int, head_dim: int):
    """Flash attention over kv tiles (online softmax) + fused full-depth output projection."""
    ki = pl.program_id(2)

    @pl.when(ki == 0)
    def _():
        m_sc[...] = jnp.full_like(m_sc, -jnp.inf)
        l_sc[...] = jnp.zeros_like(l_sc)
        acc_sc[...] = jnp.zeros_like(acc_sc)

    q = q_ref[0]                                     # (H, tq,  hd) bf16 (pre-scaled)
    k = k_ref[0]                                     # (H, tkv, hd) bf16
    v = v_ref[0]                                     # (H, tkv, hd) bf16

    # Batched over heads; contraction on the minor dims of both operands -> no K transpose.
    s = jnp.einsum("hqd,hkd->hqk", q, k, preferred_element_type=jnp.float32)  # (H, tq, tkv)

    m_prev = m_sc[...]
    m_new = jnp.maximum(m_prev, s.max(axis=-1, keepdims=True))
    alpha = jnp.exp(m_prev - m_new)
    p = jnp.exp(s - m_new)
    l_sc[...] = alpha * l_sc[...] + p.sum(axis=-1, keepdims=True)
    pv = jnp.einsum("hqk,hkd->hqd", p.astype(v.dtype), v,
                    preferred_element_type=jnp.float32)                        # (H, tq, hd)
    acc_sc[...] = alpha * acc_sc[...] + pv
    m_sc[...] = m_new

    @pl.when(ki == pl.num_programs(2) - 1)
    def _():
        inv_l = pl.reciprocal(l_sc[...], approx=True)       # (H, tq, 1), EUP slot
        # Assemble the lane-aligned (tq, D) pre-projection tile in VMEM scratch ...
        for h in range(n_heads):
            lo = h * head_dim
            o_sc[:, lo:lo + head_dim] = acc_sc[h] * inv_l[h]
        # ... then ONE full-depth (K = D) output projection on the MXU.
        out = jnp.dot(o_sc[...].astype(jnp.bfloat16), wo_ref[...],
                      preferred_element_type=jnp.float32) + bo_ref[...]
        out_ref[0] = out.astype(out_ref.dtype)


def _pick_tile(size: int, target: int) -> int:
    t = min(size, target)
    return t if size % t == 0 else size


def _vmem_limit(estimate_bytes: int) -> int:
    # 2x headroom over the estimate, but never more than 48 MiB so v7x (64 MiB VMEM)
    # keeps room for compiler scratch; floor keeps the default scoped limit behaviour.
    return int(min(48 * 1024 * 1024, max(16 * 1024 * 1024, 2 * estimate_bytes)))


def attention_forward(x, params, n_heads: int):
    """x: (B, S, D) float32.  params: dict of weights (see init_params)."""
    B, S, D = x.shape
    hd = D // n_heads
    eps = 1e-5

    ts = _pick_tile(S, 128)      # projection / q tile
    tq = ts
    tkv = _pick_tile(S, 512)     # kv tile >= 256 where possible (MXU depth on v6e/v7x)

    pos = params["pos_emb"][:S]                                            # (S, D) f32
    wqkv = jnp.concatenate([params["wq"], params["wk"], params["wv"]],
                           axis=1).astype(jnp.bfloat16)                    # (D, 3D) bf16
    bqkv = jnp.concatenate([params["bq"], params["bk"], params["bv"]],
                           axis=1)                                         # (1, 3D) f32
    wo = params["wo"].astype(jnp.bfloat16)                                 # (D, D) bf16
    bo = params["bo"]                                                      # (1, D) f32
    x_bf = x.astype(jnp.bfloat16)                                          # bf16 activation streaming

    # ---- Kernel 1: fused QKV projection + pos + RMSNorm -> head-major bf16 q/k/v ----
    est_a = (2 * (ts * D * 2 + ts * D * 4 + 3 * ts * D * 2)        # x / pos / qkv out blocks (x2 buffers)
             + 2 * (3 * D * D * 2 + 3 * D * 4 + 2 * D * 4)         # resident weight blocks (x2 buffers today)
             + ts * 3 * D * 4 + 6 * ts * D * 4)                    # f32 working values
    q_hm, k_hm, v_hm = pl.pallas_call(
        functools.partial(_qkv_kernel, n_heads=n_heads, head_dim=hd, eps=eps),
        out_shape=[jax.ShapeDtypeStruct((B, n_heads, S, hd), jnp.bfloat16)] * 3,
        grid_spec=pltpu.PrefetchScalarGridSpec(
            num_scalar_prefetch=0,
            grid=(B, S // ts),
            in_specs=[
                pl.BlockSpec((1, ts, D), lambda b, si: (b, si, 0)),     # x
                pl.BlockSpec((ts, D), lambda b, si: (si, 0)),           # pos emb
                pl.BlockSpec((D, 3 * D), lambda b, si: (0, 0)),         # Wqkv
                pl.BlockSpec((1, 3 * D), lambda b, si: (0, 0)),         # bqkv
                pl.BlockSpec((1, D), lambda b, si: (0, 0)),             # q_norm w
                pl.BlockSpec((1, D), lambda b, si: (0, 0)),             # k_norm w
            ],
            out_specs=[pl.BlockSpec((1, n_heads, ts, hd),
                                    lambda b, si: (b, 0, si, 0))] * 3,
        ),
        compiler_params=pltpu.CompilerParams(
            dimension_semantics=("parallel", "parallel"),
            vmem_limit_bytes=_vmem_limit(est_a)),
    )(x_bf, pos, wqkv, bqkv, params["q_norm_w"], params["k_norm_w"])

    # ---- Kernel 2: flash attention (online softmax over kv tiles) + output projection ----
    est_b = (2 * (tq * D * 2 + 2 * tkv * D * 2 + tq * D * 4)       # q / k / v / out blocks (x2 buffers)
             + 2 * (D * D * 2 + D * 4)                             # Wo / bo blocks (x2 buffers today)
             + 2 * n_heads * tq * 4 + 2 * tq * D * 4               # m, l, acc, assembly scratch
             + 2 * n_heads * tq * tkv * 4 + tq * D * 4)            # scores / probs / pv working set
    out = pl.pallas_call(
        functools.partial(_flash_kernel, n_heads=n_heads, head_dim=hd),
        out_shape=jax.ShapeDtypeStruct((B, S, D), jnp.float32),
        grid_spec=pltpu.PrefetchScalarGridSpec(
            num_scalar_prefetch=0,
            grid=(B, S // tq, S // tkv),
            in_specs=[
                pl.BlockSpec((1, n_heads, tq, hd), lambda b, qi, ki: (b, 0, qi, 0)),   # q
                pl.BlockSpec((1, n_heads, tkv, hd), lambda b, qi, ki: (b, 0, ki, 0)),  # k
                pl.BlockSpec((1, n_heads, tkv, hd), lambda b, qi, ki: (b, 0, ki, 0)),  # v
                pl.BlockSpec((D, D), lambda b, qi, ki: (0, 0)),                        # Wo
                pl.BlockSpec((1, D), lambda b, qi, ki: (0, 0)),                        # bo
            ],
            out_specs=pl.BlockSpec((1, tq, D), lambda b, qi, ki: (b, qi, 0)),
            scratch_shapes=[
                pltpu.VMEM((n_heads, tq, 1), jnp.float32),    # running max
                pltpu.VMEM((n_heads, tq, 1), jnp.float32),    # running sum
                pltpu.VMEM((n_heads, tq, hd), jnp.float32),   # f32 output accumulator
                pltpu.VMEM((tq, D), jnp.float32),             # lane-aligned head assembly
            ],
        ),
        compiler_params=pltpu.CompilerParams(
            dimension_semantics=("parallel", "parallel", "arbitrary"),
            vmem_limit_bytes=_vmem_limit(est_b)),
    )(q_hm, k_hm, v_hm, wo, bo)
    return out


def init_params(key, hidden_size: int, max_length: int):
    """Deterministic synthetic parameters. Linear weights stored as (in, out) so the
    kernel computes x @ W + b (equivalent to PyTorch's x @ W.T + b)."""
    ks = jax.random.split(key, 11)
    D = hidden_size
    std = 0.02
    f32 = jnp.float32
    return {
        "wq": jax.random.normal(ks[0], (D, D), f32) * std,
        "bq": jax.random.normal(ks[1], (1, D), f32) * std,
        "wk": jax.random.normal(ks[2], (D, D), f32) * std,
        "bk": jax.random.normal(ks[3], (1, D), f32) * std,
        "wv": jax.random.normal(ks[4], (D, D), f32) * std,
        "bv": jax.random.normal(ks[5], (1, D), f32) * std,
        "wo": jax.random.normal(ks[6], (D, D), f32) * std,
        "bo": jax.random.normal(ks[7], (1, D), f32) * std,
        # PyTorch RMSNorm initializes weight to ones; perturb slightly (deterministic)
        # so the affine scale is exercised.
        "q_norm_w": jnp.ones((1, D), f32) + jax.random.normal(ks[8], (1, D), f32) * 0.01,
        "k_norm_w": jnp.ones((1, D), f32) + jax.random.normal(ks[9], (1, D), f32) * 0.01,
        "pos_emb": jax.random.normal(ks[10], (max_length, D), f32) * 0.02,
    }


def attention_reference(x, params, n_heads: int):
    """Pure-JAX f32 reference reproducing the PyTorch forward (eval, mask=None)."""
    B, S, D = x.shape
    hd = D // n_heads
    q = x @ params["wq"] + params["bq"]
    k = x @ params["wk"] + params["bk"]
    v = x @ params["wv"] + params["bv"]
    pos = params["pos_emb"][:S]
    q = q + pos
    k = k + pos
    eps = 1e-5
    q = q * lax.rsqrt(jnp.mean(q * q, -1, keepdims=True) + eps) * params["q_norm_w"]
    k = k * lax.rsqrt(jnp.mean(k * k, -1, keepdims=True) + eps) * params["k_norm_w"]
    qh = q.reshape(B, S, n_heads, hd).transpose(0, 2, 1, 3)
    kh = k.reshape(B, S, n_heads, hd).transpose(0, 2, 1, 3)
    vh = v.reshape(B, S, n_heads, hd).transpose(0, 2, 1, 3)
    s = jnp.einsum("bhqd,bhkd->bhqk", qh, kh) / math.sqrt(hd)
    p = jax.nn.softmax(s, axis=-1)
    o = jnp.einsum("bhqk,bhkd->bhqd", p, vh)
    o = o.transpose(0, 2, 1, 3).reshape(B, S, D)
    return o @ params["wo"] + params["bo"]


if __name__ == "__main__":
    # Small shapes consistent with the module: batch=2, seq=8, hidden=32, heads=4.
    B, S, D, H = 2, 8, 32, 4
    MAX_LEN = 77 + 196

    key = jax.random.PRNGKey(0)
    k_x, k_p = jax.random.split(key)
    x = jax.random.normal(k_x, (B, S, D), jnp.float32)
    params = init_params(k_p, D, MAX_LEN)

    out = attention_forward(x, params, n_heads=H)
    out = jax.block_until_ready(out)

    ref = attention_reference(x, params, n_heads=H)
    assert out.shape == (B, S, D)
    # bf16 MXU operands + approx softmax reciprocal perturb results slightly vs. the
    # pure-f32 reference, so the tolerance is looser than an f32-only version.
    err = float(jnp.max(jnp.abs(out - ref)))
    assert jnp.allclose(out, ref, atol=2e-2, rtol=2e-2), err

    print("KERNEL_OK")
</pallas_src>

<mosaic_0001>
module attributes {stable_mosaic.version = 11 : i64} {
  func.func @_qkv_kernel(%arg0: i32, %arg1: i32, %arg2: memref<1x8x32xbf16, #tpu.memory_space<vmem>>, %arg3: memref<8x32xf32, #tpu.memory_space<vmem>>, %arg4: memref<32x96xbf16, #tpu.memory_space<vmem>>, %arg5: memref<1x96xf32, #tpu.memory_space<vmem>>, %arg6: memref<1x32xf32, #tpu.memory_space<vmem>>, %arg7: memref<1x32xf32, #tpu.memory_space<vmem>>, %arg8: memref<1x4x8x8xbf16, #tpu.memory_space<vmem>>, %arg9: memref<1x4x8x8xbf16, #tpu.memory_space<vmem>>, %arg10: memref<1x4x8x8xbf16, #tpu.memory_space<vmem>>) attributes {dimension_semantics = [#tpu.dimension_semantics<parallel>, #tpu.dimension_semantics<parallel>], iteration_bounds = array<i64: 2, 1>, scalar_prefetch = 0 : i64, scratch_operands = 0 : i64, tpu.core_type = #tpu.core_type<tc>, window_params = [{transform_indices = @transform_0, window_bounds = array<i64: 1, 8, 32>}, {transform_indices = @transform_1, window_bounds = array<i64: 8, 32>}, {pipeline_mode = #tpu.pipeline_mode<synchronous>, transform_indices = @transform_2, window_bounds = array<i64: 32, 96>}, {pipeline_mode = #tpu.pipeline_mode<synchronous>, transform_indices = @transform_3, window_bounds = array<i64: 1, 96>}, {pipeline_mode = #tpu.pipeline_mode<synchronous>, transform_indices = @transform_4, window_bounds = array<i64: 1, 32>}, {pipeline_mode = #tpu.pipeline_mode<synchronous>, transform_indices = @transform_5, window_bounds = array<i64: 1, 32>}, {transform_indices = @transform_6, window_bounds = array<i64: 1, 4, 8, 8>}, {transform_indices = @transform_7, window_bounds = array<i64: 1, 4, 8, 8>}, {transform_indices = @transform_8, window_bounds = array<i64: 1, 4, 8, 8>}]} {
    %c0 = arith.constant 0 : index
    %c0_0 = arith.constant 0 : index
    %c0_1 = arith.constant 0 : index
    %0 = vector.load %arg2[%c0, %c0_0, %c0_1] : memref<1x8x32xbf16, #tpu.memory_space<vmem>>, vector<1x8x32xbf16>
    %1 = vector.shape_cast %0 : vector<1x8x32xbf16> to vector<8x32xbf16>
    %c0_2 = arith.constant 0 : index
    %c0_3 = arith.constant 0 : index
    %2 = vector.load %arg4[%c0_2, %c0_3] : memref<32x96xbf16, #tpu.memory_space<vmem>>, vector<32x96xbf16>
    %cst = arith.constant dense<0.000000e+00> : vector<8x96xf32>
    %3 = tpu.matmul %1, %2, %cst {dimension_numbers = #tpu.dot_dimension_numbers<[1], [0], [0], [1], [0, 0, 1, 1], [], []>} : vector<8x32xbf16>, vector<32x96xbf16>, vector<8x96xf32> -> vector<8x96xf32>
    %c0_4 = arith.constant 0 : index
    %c0_5 = arith.constant 0 : index
    %4 = vector.load %arg5[%c0_4, %c0_5] : memref<1x96xf32, #tpu.memory_space<vmem>>, vector<1x96xf32>
    %5 = vector.broadcast %4 : vector<1x96xf32> to vector<8x96xf32>
    %6 = arith.addf %3, %5 : vector<8x96xf32>
    %c0_6 = arith.constant 0 : index
    %c0_7 = arith.constant 0 : index
    %7 = vector.load %arg3[%c0_6, %c0_7] : memref<8x32xf32, #tpu.memory_space<vmem>>, vector<8x32xf32>
    %8 = vector.extract_strided_slice %6 {offsets = [0, 0], sizes = [8, 32], strides = [1, 1]} : vector<8x96xf32> to vector<8x32xf32>
    %9 = arith.addf %8, %7 : vector<8x32xf32>
    %10 = vector.extract_strided_slice %6 {offsets = [0, 32], sizes = [8, 32], strides = [1, 1]} : vector<8x96xf32> to vector<8x32xf32>
    %11 = arith.addf %10, %7 : vector<8x32xf32>
    %12 = vector.extract_strided_slice %6 {offsets = [0, 64], sizes = [8, 32], strides = [1, 1]} : vector<8x96xf32> to vector<8x32xf32>
    %13 = arith.mulf %9, %9 : vector<8x32xf32>
    %cst_8 = arith.constant dense<0.000000e+00> : vector<8xf32>
    %14 = vector.multi_reduction <add>, %13, %cst_8 [1] : vector<8x32xf32> to vector<8xf32>
    %15 = vector.shape_cast %14 : vector<8xf32> to vector<8x1xf32>
    %cst_9 = arith.constant 3.200000e+01 : f32
    %16 = vector.broadcast %cst_9 : f32 to vector<8x1xf32>
    %17 = arith.divf %15, %16 : vector<8x1xf32>
    %cst_10 = arith.constant 9.99999974E-6 : f32
    %18 = vector.broadcast %cst_10 : f32 to vector<8x1xf32>
    %19 = arith.addf %17, %18 : vector<8x1xf32>
    %20 = math.rsqrt %19 : vector<8x1xf32>
    %21 = vector.broadcast %20 : vector<8x1xf32> to vector<8x32xf32>
    %22 = arith.mulf %9, %21 : vector<8x32xf32>
    %c0_11 = arith.constant 0 : index
    %c0_12 = arith.constant 0 : index
    %23 = vector.load %arg6[%c0_11, %c0_12] : memref<1x32xf32, #tpu.memory_space<vmem>>, vector<1x32xf32>
    %24 = vector.broadcast %23 : vector<1x32xf32> to vector<8x32xf32>
    %25 = arith.mulf %22, %24 : vector<8x32xf32>
    %26 = arith.mulf %11, %11 : vector<8x32xf32>
    %cst_13 = arith.constant dense<0.000000e+00> : vector<8xf32>
    %27 = vector.multi_reduction <add>, %26, %cst_13 [1] : vector<8x32xf32> to vector<8xf32>
    %28 = vector.shape_cast %27 : vector<8xf32> to vector<8x1xf32>
    %cst_14 = arith.constant 3.200000e+01 : f32
    %29 = vector.broadcast %cst_14 : f32 to vector<8x1xf32>
    %30 = arith.divf %28, %29 : vector<8x1xf32>
    %cst_15 = arith.constant 9.99999974E-6 : f32
    %31 = vector.broadcast %cst_15 : f32 to vector<8x1xf32>
    %32 = arith.addf %30, %31 : vector<8x1xf32>
    %33 = math.rsqrt %32 : vector<8x1xf32>
    %34 = vector.broadcast %33 : vector<8x1xf32> to vector<8x32xf32>
    %35 = arith.mulf %11, %34 : vector<8x32xf32>
    %c0_16 = arith.constant 0 : index
    %c0_17 = arith.constant 0 : index
    %36 = vector.load %arg7[%c0_16, %c0_17] : memref<1x32xf32, #tpu.memory_space<vmem>>, vector<1x32xf32>
    %37 = vector.broadcast %36 : vector<1x32xf32> to vector<8x32xf32>
    %38 = arith.mulf %35, %37 : vector<8x32xf32>
    %cst_18 = arith.constant 0.353553385 : f32
    %39 = vector.broadcast %cst_18 : f32 to vector<8x32xf32>
    %40 = arith.mulf %25, %39 : vector<8x32xf32>
    %41 = vector.extract_strided_slice %40 {offsets = [0, 0], sizes = [8, 8], strides = [1, 1]} : vector<8x32xf32> to vector<8x8xf32>
    %42 = arith.truncf %41 : vector<8x8xf32> to vector<8x8xbf16>
    %c0_19 = arith.constant 0 : index
    %c0_20 = arith.constant 0 : index
    %c0_21 = arith.constant 0 : index
    %c0_22 = arith.constant 0 : index
    %43 = vector.load %arg8[%c0_19, %c0_20, %c0_21, %c0_22] : memref<1x4x8x8xbf16, #tpu.memory_space<vmem>>, vector<1x1x8x8xbf16>
    %44 = vector.shape_cast %43 : vector<1x1x8x8xbf16> to vector<8x8xbf16>
    %45 = vector.shape_cast %42 : vector<8x8xbf16> to vector<1x1x8x8xbf16>
    tpu.vector_store %arg8[%c0_19, %c0_20, %c0_21, %c0_22], %45 {strides = array<i32>} : memref<1x4x8x8xbf16, #tpu.memory_space<vmem>>, vector<1x1x8x8xbf16>,
    %46 = vector.extract_strided_slice %38 {offsets = [0, 0], sizes = [8, 8], strides = [1, 1]} : vector<8x32xf32> to vector<8x8xf32>
    %47 = arith.truncf %46 : vector<8x8xf32> to vector<8x8xbf16>
    %c0_23 = arith.constant 0 : index
    %c0_24 = arith.constant 0 : index
    %c0_25 = arith.constant 0 : index
    %c0_26 = arith.constant 0 : index
    %48 = vector.load %arg9[%c0_23, %c0_24, %c0_25, %c0_26] : memref<1x4x8x8xbf16, #tpu.memory_space<vmem>>, vector<1x1x8x8xbf16>
    %49 = vector.shape_cast %48 : vector<1x1x8x8xbf16> to vector<8x8xbf16>
    %50 = vector.shape_cast %47 : vector<8x8xbf16> to vector<1x1x8x8xbf16>
    tpu.vector_store %arg9[%c0_23, %c0_24, %c0_25, %c0_26], %50 {strides = array<i32>} : memref<1x4x8x8xbf16, #tpu.memory_space<vmem>>, vector<1x1x8x8xbf16>,
    %51 = vector.extract_strided_slice %12 {offsets = [0, 0], sizes = [8, 8], strides = [1, 1]} : vector<8x32xf32> to vector<8x8xf32>
    %52 = arith.truncf %51 : vector<8x8xf32> to vector<8x8xbf16>
    %c0_27 = arith.constant 0 : index
    %c0_28 = arith.constant 0 : index
    %c0_29 = arith.constant 0 : index
    %c0_30 = arith.constant 0 : index
    %53 = vector.load %arg10[%c0_27, %c0_28, %c0_29, %c0_30] : memref<1x4x8x8xbf16, #tpu.memory_space<vmem>>, vector<1x1x8x8xbf16>
    %54 = vector.shape_cast %53 : vector<1x1x8x8xbf16> to vector<8x8xbf16>
    %55 = vector.shape_cast %52 : vector<8x8xbf16> to vector<1x1x8x8xbf16>
    tpu.vector_store %arg10[%c0_27, %c0_28, %c0_29, %c0_30], %55 {strides = array<i32>} : memref<1x4x8x8xbf16, #tpu.memory_space<vmem>>, vector<1x1x8x8xbf16>,
    %56 = vector.extract_strided_slice %40 {offsets = [0, 8], sizes = [8, 8], strides = [1, 1]} : vector<8x32xf32> to vector<8x8xf32>
    %57 = arith.truncf %56 : vector<8x8xf32> to vector<8x8xbf16>
    %c0_31 = arith.constant 0 : index
    %c1 = arith.constant 1 : index
    %c0_32 = arith.constant 0 : index
    %c0_33 = arith.constant 0 : index
    %58 = vector.load %arg8[%c0_31, %c1, %c0_32, %c0_33] : memref<1x4x8x8xbf16, #tpu.memory_space<vmem>>, vector<1x1x8x8xbf16>
    %59 = vector.shape_cast %58 : vector<1x1x8x8xbf16> to vector<8x8xbf16>
    %60 = vector.shape_cast %57 : vector<8x8xbf16> to vector<1x1x8x8xbf16>
    tpu.vector_store %arg8[%c0_31, %c1, %c0_32, %c0_33], %60 {strides = array<i32>} : memref<1x4x8x8xbf16, #tpu.memory_space<vmem>>, vector<1x1x8x8xbf16>,
    %61 = vector.extract_strided_slice %38 {offsets = [0, 8], sizes = [8, 8], strides = [1, 1]} : vector<8x32xf32> to vector<8x8xf32>
    %62 = arith.truncf %61 : vector<8x8xf32> to vector<8x8xbf16>
    %c0_34 = arith.constant 0 : index
    %c1_35 = arith.constant 1 : index
    %c0_36 = arith.constant 0 : index
    %c0_37 = arith.constant 0 : index
    %63 = vector.load %arg9[%c0_34, %c1_35, %c0_36, %c0_37] : memref<1x4x8x8xbf16, #tpu.memory_space<vmem>>, vector<1x1x8x8xbf16>
    %64 = vector.shape_cast %63 : vector<1x1x8x8xbf16> to vector<8x8xbf16>
    %65 = vector.shape_cast %62 : vector<8x8xbf16> to vector<1x1x8x8xbf16>
    tpu.vector_store %arg9[%c0_34, %c1_35, %c0_36, %c0_37], %65 {strides = array<i32>} : memref<1x4x8x8xbf16, #tpu.memory_space<vmem>>, vector<1x1x8x8xbf16>,
    %66 = vector.extract_strided_slice %12 {offsets = [0, 8], sizes = [8, 8], strides = [1, 1]} : vector<8x32xf32> to vector<8x8xf32>
    %67 = arith.truncf %66 : vector<8x8xf32> to vector<8x8xbf16>
    %c0_38 = arith.constant 0 : index
    %c1_39 = arith.constant 1 : index
    %c0_40 = arith.constant 0 : index
    %c0_41 = arith.constant 0 : index
    %68 = vector.load %arg10[%c0_38, %c1_39, %c0_40, %c0_41] : memref<1x4x8x8xbf16, #tpu.memory_space<vmem>>, vector<1x1x8x8xbf16>
    %69 = vector.shape_cast %68 : vector<1x1x8x8xbf16> to vector<8x8xbf16>
    %70 = vector.shape_cast %67 : vector<8x8xbf16> to vector<1x1x8x8xbf16>
    tpu.vector_store %arg10[%c0_38, %c1_39, %c0_40, %c0_41], %70 {strides = array<i32>} : memref<1x4x8x8xbf16, #tpu.memory_space<vmem>>, vector<1x1x8x8xbf16>,
    %71 = vector.extract_strided_slice %40 {offsets = [0, 16], sizes = [8, 8], strides = [1, 1]} : vector<8x32xf32> to vector<8x8xf32>
    %72 = arith.truncf %71 : vector<8x8xf32> to vector<8x8xbf16>
    %c0_42 = arith.constant 0 : index
    %c2 = arith.constant 2 : index
    %c0_43 = arith.constant 0 : index
    %c0_44 = arith.constant 0 : index
    %73 = vector.load %arg8[%c0_42, %c2, %c0_43, %c0_44] : memref<1x4x8x8xbf16, #tpu.memory_space<vmem>>, vector<1x1x8x8xbf16>
    %74 = vector.shape_cast %73 : vector<1x1x8x8xbf16> to vector<8x8xbf16>
    %75 = vector.shape_cast %72 : vector<8x8xbf16> to vector<1x1x8x8xbf16>
    tpu.vector_store %arg8[%c0_42, %c2, %c0_43, %c0_44], %75 {strides = array<i32>} : memref<1x4x8x8xbf16, #tpu.memory_space<vmem>>, vector<1x1x8x8xbf16>,
    %76 = vector.extract_strided_slice %38 {offsets = [0, 16], sizes = [8, 8], strides = [1, 1]} : vector<8x32xf32> to vector<8x8xf32>
    %77 = arith.truncf %76 : vector<8x8xf32> to vector<8x8xbf16>
    %c0_45 = arith.constant 0 : index
    %c2_46 = arith.constant 2 : index
    %c0_47 = arith.constant 0 : index
    %c0_48 = arith.constant 0 : index
    %78 = vector.load %arg9[%c0_45, %c2_46, %c0_47, %c0_48] : memref<1x4x8x8xbf16, #tpu.memory_space<vmem>>, vector<1x1x8x8xbf16>
    %79 = vector.shape_cast %78 : vector<1x1x8x8xbf16> to vector<8x8xbf16>
    %80 = vector.shape_cast %77 : vector<8x8xbf16> to vector<1x1x8x8xbf16>
    tpu.vector_store %arg9[%c0_45, %c2_46, %c0_47, %c0_48], %80 {strides = array<i32>} : memref<1x4x8x8xbf16, #tpu.memory_space<vmem>>, vector<1x1x8x8xbf16>,
    %81 = vector.extract_strided_slice %12 {offsets = [0, 16], sizes = [8, 8], strides = [1, 1]} : vector<8x32xf32> to vector<8x8xf32>
    %82 = arith.truncf %81 : vector<8x8xf32> to vector<8x8xbf16>
    %c0_49 = arith.constant 0 : index
    %c2_50 = arith.constant 2 : index
    %c0_51 = arith.constant 0 : index
    %c0_52 = arith.constant 0 : index
    %83 = vector.load %arg10[%c0_49, %c2_50, %c0_51, %c0_52] : memref<1x4x8x8xbf16, #tpu.memory_space<vmem>>, vector<1x1x8x8xbf16>
    %84 = vector.shape_cast %83 : vector<1x1x8x8xbf16> to vector<8x8xbf16>
    %85 = vector.shape_cast %82 : vector<8x8xbf16> to vector<1x1x8x8xbf16>
    tpu.vector_store %arg10[%c0_49, %c2_50, %c0_51, %c0_52], %85 {strides = array<i32>} : memref<1x4x8x8xbf16, #tpu.memory_space<vmem>>, vector<1x1x8x8xbf16>,
    %86 = vector.extract_strided_slice %40 {offsets = [0, 24], sizes = [8, 8], strides = [1, 1]} : vector<8x32xf32> to vector<8x8xf32>
    %87 = arith.truncf %86 : vector<8x8xf32> to vector<8x8xbf16>
    %c0_53 = arith.constant 0 : index
    %c3 = arith.constant 3 : index
    %c0_54 = arith.constant 0 : index
    %c0_55 = arith.constant 0 : index
    %88 = vector.load %arg8[%c0_53, %c3, %c0_54, %c0_55] : memref<1x4x8x8xbf16, #tpu.memory_space<vmem>>, vector<1x1x8x8xbf16>
    %89 = vector.shape_cast %88 : vector<1x1x8x8xbf16> to vector<8x8xbf16>
    %90 = vector.shape_cast %87 : vector<8x8xbf16> to vector<1x1x8x8xbf16>
    tpu.vector_store %arg8[%c0_53, %c3, %c0_54, %c0_55], %90 {strides = array<i32>} : memref<1x4x8x8xbf16, #tpu.memory_space<vmem>>, vector<1x1x8x8xbf16>,
    %91 = vector.extract_strided_slice %38 {offsets = [0, 24], sizes = [8, 8], strides = [1, 1]} : vector<8x32xf32> to vector<8x8xf32>
    %92 = arith.truncf %91 : vector<8x8xf32> to vector<8x8xbf16>
    %c0_56 = arith.constant 0 : index
    %c3_57 = arith.constant 3 : index
    %c0_58 = arith.constant 0 : index
    %c0_59 = arith.constant 0 : index
    %93 = vector.load %arg9[%c0_56, %c3_57, %c0_58, %c0_59] : memref<1x4x8x8xbf16, #tpu.memory_space<vmem>>, vector<1x1x8x8xbf16>
    %94 = vector.shape_cast %93 : vector<1x1x8x8xbf16> to vector<8x8xbf16>
    %95 = vector.shape_cast %92 : vector<8x8xbf16> to vector<1x1x8x8xbf16>
    tpu.vector_store %arg9[%c0_56, %c3_57, %c0_58, %c0_59], %95 {strides = array<i32>} : memref<1x4x8x8xbf16, #tpu.memory_space<vmem>>, vector<1x1x8x8xbf16>,
    %96 = vector.extract_strided_slice %12 {offsets = [0, 24], sizes = [8, 8], strides = [1, 1]} : vector<8x32xf32> to vector<8x8xf32>
    %97 = arith.truncf %96 : vector<8x8xf32> to vector<8x8xbf16>
    %c0_60 = arith.constant 0 : index
    %c3_61 = arith.constant 3 : index
    %c0_62 = arith.constant 0 : index
    %c0_63 = arith.constant 0 : index
    %98 = vector.load %arg10[%c0_60, %c3_61, %c0_62, %c0_63] : memref<1x4x8x8xbf16, #tpu.memory_space<vmem>>, vector<1x1x8x8xbf16>
    %99 = vector.shape_cast %98 : vector<1x1x8x8xbf16> to vector<8x8xbf16>
    %100 = vector.shape_cast %97 : vector<8x8xbf16> to vector<1x1x8x8xbf16>
    tpu.vector_store %arg10[%c0_60, %c3_61, %c0_62, %c0_63], %100 {strides = array<i32>} : memref<1x4x8x8xbf16, #tpu.memory_space<vmem>>, vector<1x1x8x8xbf16>,
    return
  }
  func.func @transform_0(%arg0: i32, %arg1: i32) -> (i32, i32, i32) {
    %c0_i32 = arith.constant 0 : i32
    %c0_i32_0 = arith.constant 0 : i32
    return %arg0, %arg1, %c0_i32 : i32, i32, i32
  }
  func.func @transform_1(%arg0: i32, %arg1: i32) -> (i32, i32) {
    %c0_i32 = arith.constant 0 : i32
    %c0_i32_0 = arith.constant 0 : i32
    return %arg1, %c0_i32 : i32, i32
  }
  func.func @transform_2(%arg0: i32, %arg1: i32) -> (i32, i32) {
    %c0_i32 = arith.constant 0 : i32
    %c0_i32_0 = arith.constant 0 : i32
    %c0_i32_1 = arith.constant 0 : i32
    return %c0_i32, %c0_i32_0 : i32, i32
  }
  func.func @transform_3(%arg0: i32, %arg1: i32) -> (i32, i32) {
    %c0_i32 = arith.constant 0 : i32
    %c0_i32_0 = arith.constant 0 : i32
    %c0_i32_1 = arith.constant 0 : i32
    return %c0_i32, %c0_i32_0 : i32, i32
  }
  func.func @transform_4(%arg0: i32, %arg1: i32) -> (i32, i32) {
    %c0_i32 = arith.constant 0 : i32
    %c0_i32_0 = arith.constant 0 : i32
    %c0_i32_1 = arith.constant 0 : i32
    return %c0_i32, %c0_i32_0 : i32, i32
  }
  func.func @transform_5(%arg0: i32, %arg1: i32) -> (i32, i32) {
    %c0_i32 = arith.constant 0 : i32
    %c0_i32_0 = arith.constant 0 : i32
    %c0_i32_1 = arith.constant 0 : i32
    return %c0_i32, %c0_i32_0 : i32, i32
  }
  func.func @transform_6(%arg0: i32, %arg1: i32) -> (i32, i32, i32, i32) {
    %c0_i32 = arith.constant 0 : i32
    %c0_i32_0 = arith.constant 0 : i32
    %c0_i32_1 = arith.constant 0 : i32
    return %arg0, %c0_i32, %arg1, %c0_i32_0 : i32, i32, i32, i32
  }
  func.func @transform_7(%arg0: i32, %arg1: i32) -> (i32, i32, i32, i32) {
    %c0_i32 = arith.constant 0 : i32
    %c0_i32_0 = arith.constant 0 : i32
    %c0_i32_1 = arith.constant 0 : i32
    return %arg0, %c0_i32, %arg1, %c0_i32_0 : i32, i32, i32, i32
  }
  func.func @transform_8(%arg0: i32, %arg1: i32) -> (i32, i32, i32, i32) {
    %c0_i32 = arith.constant 0 : i32
    %c0_i32_0 = arith.constant 0 : i32
    %c0_i32_1 = arith.constant 0 : i32
    return %arg0, %c0_i32, %arg1, %c0_i32_0 : i32, i32, i32, i32
  }
}

</mosaic_0001>

<bundles_post_ra>
// kernel: tpu_custom_call.1
= control target key start
LH: loop header
LB: loop body
LE: loop exit
PB: predicated region body
PF: predicated region fallthrough
CT: control target
= control target key end

     0   :  { %s1663_s0 = inlined_call_operand.hbm [shape: bf16[2,8,32], index: 0, kind: input, shape index: {}]   ;;  %s1664_s1 = inlined_call_operand.hbm [shape: f32[8,32], index: 1, kind: input, shape index: {}]   ;;  %s1665_s2 = inlined_call_operand.hbm [shape: bf16[32,96], index: 2, kind: input, shape index: {}]   ;;  %s1666_s3 = inlined_call_operand.vmem [shape: f32[1,96], index: 3, kind: input, shape index: {}]   ;;  %s1667_s4 = inlined_call_operand.vmem [shape: f32[1,32], index: 4, kind: input, shape index: {}]   ;;  %s1668_s5 = inlined_call_operand.vmem [shape: f32[1,32], index: 5, kind: input, shape index: {}]   ;;  %s1669_s6 = inlined_call_operand.hbm [shape: bf16[2,4,8,8], index: 6, kind: output, shape index: {0}]   ;;  %s1670_s7 = inlined_call_operand.hbm [shape: bf16[2,4,8,8], index: 7, kind: output, shape index: {1}]   ;;  %s1671_s8 = inlined_call_operand.hbm [shape: bf16[2,4,8,8], index: 8, kind: output, shape index: {2}]  }
   0x1   :  { %1678 = sst [smem:[#allocation16_spill]] %s1663_s0 }
   0x2   :  { %1679 = sst [smem:[#allocation17_spill]] %s1664_s1 }
   0x3   :  { %1680 = sst [smem:[#allocation18_spill]] %s1665_s2 }
   0x4   :  { %1681 = sst [smem:[#allocation19_spill]] %s1666_s3 }
   0x5   :  { %1682 = sst [smem:[#allocation20_spill]] %s1667_s4 }
   0x6   :  { %1683 = sst [smem:[#allocation21_spill]] %s1668_s5 }
   0x7   :  { %14 = vsyncpa [#allocation3], 0 }
   0x8   :  { %16 = vsyncpa [#allocation3 + $0x1], 0 }
   0x9   :  { %17 = vsyncpa [#allocation6], 0 }
   0xa   :  { %18 = vsyncpa [#allocation4], 0 }
   0xb   :  { %20 = vsyncpa [#allocation4 + $0x1], 0 }
   0xc   :  { %21 = vsyncpa [#allocation10], 0 }
   0xd   :  { %23 = vsyncpa [#allocation10 + $0x1], 0  ;;  %s1285_s27 = smov 0   ;;  %s1287_s28 = smov 0  }
   0xe   :  { %s1289_s29 = smov 0   ;;  %s1291_s30 = smov 0  }
   0xf   :  { %s1293_s9 = smov 0   ;;  %s1295_s10 = smov 0  }
  0x10 LB: > { %s1316_s11 = sadd.s32 4294967295, %s1215_s10   ;;  %s1675_s12 = sadd.s32 4294967294, %s1215_s10   ;;  %s1215_s10 = sphi %s1295_s10, %s29_s10   ;;  %s1211_s9 = sphi %s1293_s9, %s1711_s9   ;;  %s1207_s30 = sphi %s1291_s30, %s1710_s30   ;;  %s1203_s29 = sphi %s1289_s29, %s1709_s29   ;;  %s1199_s28 = sphi %s1287_s28, %s1708_s28   ;;  %s1195_s27 = sphi %s1285_s27, %s1707_s27  }
  0x11   : > { %p63_p0 = scmp.ne.s32.totalorder %s1199_s28, %s1195_s27  ;;  %p1672_p1 = scmp.eq.s32.totalorder %s1316_s11, 0 }
  0x12   : > { %p205_p3 = scmp.eq.s32.totalorder %s1675_s12, 1  ;;  %p808_p5 = scmp.ge.s32.totalorder %s1215_s10, 1 }
  0x13   : > { %p1327_p4 = por %p1672_p1, %p63_p0  ;;  %p268_p7 = scmp.lt.s32.totalorder %s1215_s10, 3 }
  0x14   : > { %p1332_p6 = por %p205_p3, %p63_p0  ;;  %s1217_s16 = smov [#allocation5]  }
  0x15   : > { %s1684_s13 = scalar_select %p1327_p4, 1, 0 }
  0x16   : > { %s1685_s14 = scalar_select %p1332_p6, 1, 0 }
  0x17   : > { %p1337_p8 = pnand %p808_p5, %p268_p7  ;;  %s283_s17 = sshll.u32 %s1217_s16, 4  ;;  %s284_s17 = int_to_ptr.vmem [resolvable:$true] %s283_s17 }
  0x18   : > { %s1218_s18 = smov [#allocation7]   ;;  %s1688_s1 = sld [smem:[#allocation17_spill]] }
  0x19   : > { %s1686_s15 = scalar_select %p1337_p8, 1, 0 }
  0x1a   : > { %p883_p10 = pneg %p1337_p8  ;;  %s293_s19 = sshll.u32 %s1218_s18, 4  ;;  %s1350_s19 = int_to_ptr.vmem [resolvable:$true] %s293_s19 }
  0x1c   : > { %p1346_p11 = pnand %p883_p10, %p1672_p1 }
  0x1e   : > { %s983_s23 = scalar_lea.hbm %s1688_s1, 128  ;;  %p985_p13 = pneg %p1346_p11 }
  0x1f   : > { %p984_p12 = scmp.ne.s32.totalorder %s1688_s1, %s983_s23  ;;  %p990_p5 = scmp.lt.u32.totalorder %s983_s23, %s1688_s1 }
  0x21   : > { %p986_p0 = pnand %p985_p13, %p984_p12 }
  0x23   : > { %p987_p3 = pneg %p986_p0 }
  0x25   : > { %p992_p7 = pnand %p990_p5, %p987_p3 }
  0x27   : > { %995 = shalt.err (!%p992_p7)
}
  0x28   : > { %s996_s18 = scalar_lea.vmem %s284_s17, 128  ;;  %p1004_p2 = scmp.lt.s32.totalorder %s284_s17, %s284_s17 }
  0x29   : > { %p997_p10 = scmp.ne.s32.totalorder %s284_s17, %s996_s18  ;;  %p1005_p6 = scmp.lt.s32.totalorder %s996_s18, %s996_s18 }
  0x2b   : > { %p999_p9 = pnand %p997_p10, %p985_p13  ;;  %p1006_p4 = por %p1005_p6, %p1004_p2 }
  0x2d   : > { %p1000_p1 = pneg %p999_p9 }
  0x2f   : > { %p1007_p8 = pnand %p1006_p4, %p1000_p1 }
  0x31   : > { %1010 = shalt.err (!%p1007_p8)
}
  0x32   : > { %886 = dma.hbm_to_vmem [thread:$0]  (!%p1346_p11), %s1688_s1, 128, %s284_s17, [#allocation6]  }
  0x33   : > { %s1689_s2 = sld [smem:[#allocation18_spill]] }
  0x39   : > { %s1011_s25 = scalar_lea.hbm %s1689_s2, 256 }
  0x3a   : > { %p1012_p9 = scmp.ne.s32.totalorder %s1689_s2, %s1011_s25  ;;  %p1018_p4 = scmp.lt.u32.totalorder %s1011_s25, %s1689_s2 }
  0x3c   : > { %p1014_p2 = pnand %p1012_p9, %p985_p13 }
  0x3e   : > { %p1015_p1 = pneg %p1014_p2 }
  0x40   : > { %p1020_p6 = pnand %p1018_p4, %p1015_p1 }
  0x42   : > { %1023 = shalt.err (!%p1020_p6)
}
  0x43   : > { %s1024_s17 = scalar_lea.vmem %s1350_s19, 256  ;;  %p1032_p3 = scmp.lt.s32.totalorder %s1350_s19, %s1350_s19 }
  0x44   : > { %p1025_p8 = scmp.ne.s32.totalorder %s1350_s19, %s1024_s17  ;;  %p1033_p5 = scmp.lt.s32.totalorder %s1024_s17, %s1024_s17 }
  0x46   : > { %p1027_p12 = pnand %p1025_p8, %p985_p13  ;;  %p1034_p7 = por %p1033_p5, %p1032_p3 }
  0x48   : > { %p1028_p0 = pneg %p1027_p12 }
  0x4a   : > { %p1035_p10 = pnand %p1034_p7, %p1028_p0 }
  0x4c   : > { %1038 = shalt.err (!%p1035_p10)
}
  0x4d   : > { %s1219_s12 = smov 64   ;;  %s1220_s21 = smov 4  }
  0x4e   : > { %889 = dma.hbm_to_vmem [thread:$0]  (!%p1346_p11), %s1689_s2, 256, %s1350_s19, [#allocation6], %s1219_s12, %s1219_s12, %s1220_s21  }
  0x4f   : > { %s41_s24 = sadd.s32 1, %s1211_s9  ;;  %s50_s25 = sadd.s32 1, %s1203_s29 }
  0x50   : > { %p43_p13 = scmp.ge.s32.totalorder %s41_s24, 2  ;;  %p57_p9 = scmp.ne.s32.totalorder %s1203_s29, %s1199_s28 }
  0x51   : > { %p58_p2 = scmp.eq.s32.totalorder %s1215_s10, 0  ;;  %p906_p1 = scmp.lt.s32.totalorder %s1215_s10, 2 }
  0x52   : > { %s1713_s24 = smov (%p43_p13, %s41_s24), 0  ;;  %p1690_p6 = scmp.eq.s32.totalorder %s1316_s11, 1 }
  0x53   : > { %p59_p4 = por %p58_p2, %p57_p9  ;;  %s45_s20 = ssub.s32 %s1211_s9, %s1713_s24 }
  0x54   : > { %p1409_p8 = por %p1690_p6, %p57_p9  ;;  %s316_s16 = sand.u32 1, %s1203_s29  }
  0x55   : > { %p48_p12 = scmp.eq.s32.totalorder %s45_s20, 0  ;;  %s812_s19 = sshll.u32 %s316_s16, 2 }
  0x56   : > { %s813_s18 = sshll.u32 %s1211_s9, 6  ;;  %s1692_s0 = sld [smem:[#allocation16_spill]] }
  0x57   : > { %s1418_s17 = scalar_select %p48_p12, %s1203_s29, %s50_s25  }
  0x58   : > { %s320_s23 = scalar_lea.vmem [#allocation2], %s812_s19  ;;  %p1427_p11 = pnand %p906_p1, %p59_p4 }
  0x59   : > { %s328_s1 = sshll.u32 %s320_s23, 4  ;;  %s317_s25 = scalar_lea.sflag [#allocation3], %s316_s16  ;;  %s1431_s1 = int_to_ptr.vmem [resolvable:$true] %s328_s1 }
  0x5a   : > { %p1041_p3 = pneg %p1427_p11 }
  0x5c   : > { %s1423_s22 = scalar_lea.hbm %s1692_s0, %s813_s18  ;;  %s1044_s12 = scalar_lea.hbm %s1692_s0, 128 }
  0x5d   : > { %s1039_s20 = scalar_lea.hbm %s1423_s22, 64  ;;  %p1045_p10 = scmp.lt.u32.totalorder %s1423_s22, %s1692_s0 }
  0x5e   : > { %p1040_p0 = scmp.ne.s32.totalorder %s1423_s22, %s1039_s20  ;;  %p1046_p13 = scmp.lt.u32.totalorder %s1044_s12, %s1039_s20 }
  0x5f   : > { %p1048_p2 = scmp.lt.u32.totalorder %s1039_s20, %s1423_s22 }
  0x60   : > { %p1042_p5 = pnand %p1041_p3, %p1040_p0  ;;  %p1047_p9 = por %p1046_p13, %p1045_p10 }
  0x62   : > { %p1043_p7 = pneg %p1042_p5  ;;  %p1049_p1 = por %p1048_p2, %p1047_p9 }
  0x64   : > { %p1050_p4 = pnand %p1049_p1, %p1043_p7 }
  0x66   : > { %1053 = shalt.err (!%p1050_p4)
}
  0x67   : > { %s1054_s16 = scalar_lea.vmem %s1431_s1, 64  ;;  %s1221_s19 = smov [#allocation2]  }
  0x68   : > { %p1055_p6 = scmp.ne.s32.totalorder %s1431_s1, %s1054_s16  ;;  %s1059_s18 = sshll.u32 %s1221_s19, 4  ;;  %s1060_s18 = int_to_ptr.vmem [resolvable:$false] %s1059_s18 }
  0x69   : > { %s1061_s21 = scalar_lea.vmem %s1060_s18, 128  ;;  %p1062_p5 = scmp.lt.s32.totalorder %s1431_s1, %s1060_s18 }
  0x6a   : > { %p1057_p12 = pnand %p1055_p6, %p1041_p3  ;;  %p1063_p10 = scmp.lt.s32.totalorder %s1061_s21, %s1054_s16 }
  0x6c   : > { %p1058_p0 = pneg %p1057_p12  ;;  %p1064_p13 = por %p1063_p10, %p1062_p5 }
  0x6e   : > { %p1065_p9 = pnand %p1064_p13, %p1058_p0 }
  0x70   : > { %1068 = shalt.err (!%p1065_p9)
}
  0x71   : > { %893 = dma.hbm_to_vmem [thread:$0]  (!%p1427_p11), %s1423_s22, 64, %s1431_s1, %s317_s25  }
  0x72   : > { %p1694_p7 = scmp.ne.s32.totalorder %s1686_s15, 0 }
  0x73   : > { %s1461_s20 = sand.u32 (!%p1694_p7), 1, %s1199_s28   ;;  %p1695_p3 = scmp.ne.s32.totalorder (!%p1694_p7), %s1684_s13, 0 }
  0x74   : > { %337 = sbr.rel (%p1694_p7) target bundleno = 815 (0x32f), region = 44  ;;  %s815_s12 = sshll.u32 (!%p1694_p7), %s1461_s20, 2 }
  0x75   : > { %s340_s23 = scalar_lea.sflag (!%p1694_p7), [#allocation3], %s1461_s20  ;;  %s343_s16 = scalar_lea.vmem (!%p1694_p7), [#allocation2], %s815_s12 }
  0x7b   : > { %1178 = dma.done.wait (%p1695_p3), %s340_s23, 64  }
  0x7c   : > { %1180 = vsyncadd (%p1695_p3), %s340_s23, 4294967232  ;;  %p1696_p2 = scmp.eq.s32.totalorder %s1316_s11, 0 }
  0x7e   : > { %1182 = dma.done.wait (%p1696_p2), [#allocation6], 384   ;;  %p1697_p11 = pmov %p1696_p2 }
  0x7f   : > { %v1222_v0 = vmov 0.0   ;;  %vm1223_vm0 = vmmov 0   ;;  %v977_v1 = vld [vmem:[#allocation7] sm:$0xff]   ;;  %v978_v2 = vld [vmem:[#allocation7 + $0x8] sm:$0xff]   ;;  %v463_v3 = vld [vmem:[#allocation5] sm:$0xff]  ;;  %s1224_s1 = smov 32  }
  0x80   : > { %1184 = vsyncadd (%p1697_p11), [#allocation6], 4294966912  ;;  %859 = vmatprep.subr.bf16.mxu0 %v1222_v0  ;;  %863 = vmatprep.mubr.msk.bf16.mxu0 %vm1223_vm0, %v1222_v0  ;;  %v395_v4 = vld [vmem:[%s343_s16] sm:$0xf]  ;;  %vm419_vm1 = vcmask 261120   ;;  %s1698_s3 = sld [smem:[#allocation19_spill]] }
  0x81   : > { %860 = vmatpush3.bf16.msra.mxu0 %v977_v1  ;;  %466 = vrot.lane.b32.xlu0 %v463_v3, %s1224_s1  ;;  %s1225_s15 = smov 96   ;;  %s1699_s5 = sld [smem:[#allocation21_spill]]  ;;  %vm511_vm2 = vcmask 60416  }
  0x82   : > { %861 = vmatprep.subr.bf16.mxu0 %v1222_v0  ;;  %s1676_s19 = smov 64   ;;  %s1227_s18 = smov 56  }
  0x83   : > { %s1228_s21 = smov 48   ;;  %s1485_s12 = sshll.u32 %s1461_s20, 4 }
  0x84   : > { %s1488_s23 = scalar_lea.vmem [#allocation11], %s1485_s12  ;;  %s1700_s4 = sld [smem:[#allocation20_spill]] }
  0x85   : > { %862 = vmatpush3.bf16.msra.mxu0 %v978_v2  ;;  %s1229_s2 = smov 120   ;;  %s1500_s13 = scalar_lea.vmem [#allocation8], %s1485_s12 }
  0x86   : > { %v821_v5 = vld [vmem:[%s1698_s3] ss:$0 sm:$0xff]  ;;  %s1230_s22 = smov 112   ;;  %s1231_s25 = smov 88  }
  0x87   : > { %v826_v17 = vld [vmem:[%s1699_s5] ss:$0 sm:$0xff]  ;;  %s1234_s16 = smov 72  }
  0x88   : > { %864 = vmatmul.mubr.msk.bf16.vlgmr.msra.gmra.mrb[0].mxu0 %vm419_vm1, %v395_v4 }
  0x8a   : > { %v825_v29 = vld [vmem:[%s1700_s4] ss:$0 sm:$0xff] }
  0xf3   : > { %v467_v7 = vpop.permute.xlu0 %466 }
 0x15b   : > { %v457_v6 = vpop.f32.mrb[0].mxu0 }
 0x15c   : > { %v458_v8 = vadd.f32 %v821_v5, %v457_v6  ;;  %v865_v9 = vpop.f32.mrb[1].mxu0 }
 0x15d   : > { %v460_v10 = vpop.f32.mrb[2].mxu0 }
 0x15e   : > { %v469_v11 = vadd.f32 %v467_v7, %v458_v8  ;;  %v866_v12 = vpop.f32.mrb[3].mxu0  ;;  %v464_v13 = vadd.f32 %v463_v3, %v458_v8  ;;  %v851_v18 = vpack.c.bf16 %v458_v8, %v458_v8 }
 0x160   : > { %v487_v14 = vmul.f32 %v469_v11, %v469_v11  ;;  %v470_v15 = vmul.f32 %v464_v13, %v464_v13 }
 0x162   : > { %489 = vrot.lane.b32.xlu0 %v487_v14, %s1225_s15  ;;  %v471_v16 = vsel %vm419_vm1, %v470_v15, 0.0 }
 0x163   : > { %472 = vadd.xlane.f32.xlu1 %v471_v16 }
 0x166   : > { %505 = vrot.lane.b32.xlu0 %v826_v17, %s1224_s1  ;;  %s1235_s1 = smov 40  }
 0x16a   : > { %525 = vrot.lane.b32.xlu0 %v851_v18, %s1676_s19  ;;  %s1236_s19 = smov [#allocation8]  }
 0x16e   : > { %542 = vrot.lane.b32.xlu0 %v851_v18, %s1227_s18  ;;  %s1232_s18 = smov 80  }
 0x172   : > { %557 = vrot.lane.b32.xlu0 %v851_v18, %s1228_s21  ;;  %s1233_s21 = smov 104  }
 0x1d4   : > { %v490_v19 = vpop.permute.xlu0 %489 }
 0x1d5   : > { %v492_v20 = vsel %vm419_vm1, %v490_v19, 0.0 }
 0x1d6   : > { %493 = vadd.xlane.f32.xlu1 %v492_v20 }
 0x1d8   : > { %v506_v21 = vpop.permute.xlu0 %505 }
 0x1dc   : > { %v526_v22 = vpop.permute.xlu0 %525 }
 0x1dd   : > { %528 = vst.msk [vmem:[%s1488_s23] sm:$0xf] %vm511_vm2, %v526_v22 }
 0x1e0   : > { %v543_v23 = vpop.permute.xlu0 %542 }
 0x1e1   : > { %832 = vst.msk [vmem:[%s1488_s23 + $0x4] sm:$0xf] %vm511_vm2, %v543_v23 }
 0x1e4   : > { %v558_v24 = vpop.permute.xlu0 %557 }
 0x1e5   : > { %835 = vst.msk [vmem:[%s1488_s23 + $0x8] sm:$0xf] %vm511_vm2, %v558_v24 }
 0x1f0   : > { %v473_v25 = vpop.xlane.xlu1 %472 }
 0x1f1   : > { %v475_v26 = vmul.f32 0.03125, %v473_v25 }
 0x1f3   : > { %v476_v27 = vadd.f32 1e-05, %v475_v26 }
 0x1f5   : > { %979 = vrsqrt.f32 %v476_v27 }
 0x1ff   : > { %v980_v28 = vpop.eup %979 }
 0x200   : > { %v478_v30 = vmul.f32 %v980_v28, %v464_v13 }
 0x202   : > { %v486_v31 = vmul.f32 %v825_v29, %v478_v30 }
 0x204   : > { %v509_v32 = vmul.f32 0.35355338, %v486_v31 }
 0x206   : > { %v510_v33 = vpack.c.bf16 %v509_v32, %v509_v32 }
 0x208   : > { %532 = vrot.lane.b32.xlu1 %v510_v33, %s1229_s2  ;;  %512 = vst.msk [vmem:[%s1500_s13] sm:$0xf] %vm511_vm2, %v510_v33  ;;  %s602_s2 = sshll.u32 %s1500_s13, 4  ;;  %s1513_s2 = int_to_ptr.vmem [resolvable:$true] %s602_s2 }
 0x20c   : > { %547 = vrot.lane.b32.xlu1 %v510_v33, %s1230_s22  ;;  %s1516_s22 = scalar_lea.vmem [#allocation9], %s1485_s12 }
 0x263   : > { %v494_v34 = vpop.xlane.xlu1 %493 }
 0x264   : > { %v495_v35 = vmul.f32 0.03125, %v494_v34 }
 0x266   : > { %v496_v36 = vadd.f32 1e-05, %v495_v35 }
 0x268   : > { %981 = vrsqrt.f32 %v496_v36 }
 0x272   : > { %v982_v37 = vpop.eup %981 }
 0x273   : > { %v498_v38 = vmul.f32 %v982_v37, %v469_v11 }
 0x275   : > { %v508_v39 = vmul.f32 %v506_v21, %v498_v38 }
 0x277   : > { %v850_v40 = vpack.c.bf16 %v508_v39, %v508_v39 }
 0x279   : > { %537 = vrot.lane.b32.xlu0 %v850_v40, %s1231_s25  ;;  %517 = vrot.lane.b32.xlu1 %v850_v40, %s1225_s15  ;;  %s1511_s15 = sshll.u32 %s1207_s30, 8  ;;  %s619_s25 = sshll.u32 %s1516_s22, 4  ;;  %s1530_s25 = int_to_ptr.vmem [resolvable:$true] %s619_s25 }
 0x27a   : > { %v533_v41 = vpop.permute.xlu1 %532 }
 0x27b   : > { %830 = vst.msk [vmem:[%s1500_s13 + $0x4] sm:$0xf] %vm511_vm2, %v533_v41 }
 0x27d   : > { %552 = vrot.lane.b32.xlu0 %v850_v40, %s1232_s18  ;;  %562 = vrot.lane.b32.xlu1 %v510_v33, %s1233_s21  ;;  %s1527_s21 = scalar_lea.hbm %s1669_s6, %s1511_s15  ;;  %s1073_s18 = sshll.u32 %s1236_s19, 4  ;;  %s1074_s18 = int_to_ptr.vmem [resolvable:$false] %s1073_s18 }
 0x27e   : > { %v548_v42 = vpop.permute.xlu1 %547  ;;  %s1075_s30 = scalar_lea.vmem %s1074_s18, 512  ;;  %p1076_p12 = scmp.lt.s32.totalorder %s1513_s2, %s1074_s18 }
 0x27f   : > { %833 = vst.msk [vmem:[%s1500_s13 + $0x8] sm:$0xf] %vm511_vm2, %v548_v42 }
 0x281   : > { %567 = vrot.lane.b32.xlu0 %v850_v40, %s1234_s16 }
 0x285   : > { %572 = vrot.lane.b32.xlu0 %v851_v18, %s1235_s1  ;;  %s1069_s1 = scalar_lea.vmem %s1513_s2, 256 }
 0x286   : > { %p1070_p1 = scmp.ne.s32.totalorder %s1513_s2, %s1069_s1  ;;  %p1077_p0 = scmp.lt.s32.totalorder %s1075_s30, %s1069_s1 }
 0x288   : > { %p1071_p4 = pnand %p1070_p1, %p1409_p8  ;;  %p1078_p5 = por %p1077_p0, %p1076_p12 }
 0x28a   : > { %p1072_p6 = pneg %p1071_p4 }
 0x28c   : > { %p1079_p10 = pnand %p1078_p5, %p1072_p6 }
 0x2eb   : > { %v538_v43 = vpop.permute.xlu0 %537  ;;  %v518_v44 = vpop.permute.xlu1 %517 }
 0x2ec   : > { %831 = vst.msk [vmem:[%s1516_s22 + $0x4] sm:$0xf] %vm511_vm2, %v538_v43  ;;  %520 = vst.msk [vmem:[%s1516_s22] sm:$0xf] %vm511_vm2, %v518_v44 }
 0x2ef   : > { %v553_v45 = vpop.permute.xlu0 %552  ;;  %v563_v46 = vpop.permute.xlu1 %562 }
 0x2f0   : > { %834 = vst.msk [vmem:[%s1516_s22 + $0x8] sm:$0xf] %vm511_vm2, %v553_v45  ;;  %836 = vst.msk [vmem:[%s1500_s13 + $0xc] sm:$0xf] %vm511_vm2, %v563_v46 }
 0x2f1   : > { %1082 = shalt.err (!%p1079_p10)
}
 0x2f2   : > { %s1083_s13 = scalar_lea.hbm %s1527_s21, 256  ;;  %s1087_s19 = scalar_lea.hbm %s1669_s6, 512 }
 0x2f3   : > { %p1084_p13 = scmp.ne.s32.totalorder %s1527_s21, %s1083_s13  ;;  %p1088_p3 = scmp.lt.u32.totalorder %s1527_s21, %s1669_s6 }
 0x2f4   : > { %p1089_p2 = scmp.lt.u32.totalorder %s1087_s19, %s1083_s13  ;;  %p1091_p1 = scmp.lt.u32.totalorder %s1083_s13, %s1527_s21 }
 0x2f5   : > { %p1085_p9 = pnand %p1084_p13, %p1409_p8 }
 0x2f6   : > { %p1090_p11 = por %p1089_p2, %p1088_p3 }
 0x2f7   : > { %p1086_p7 = pneg %p1085_p9 }
 0x2f8   : > { %p1092_p4 = por %p1091_p1, %p1090_p11 }
 0x2fa   : > { %p1093_p6 = pnand %p1092_p4, %p1086_p7 }
 0x2fc   : > { %1096 = shalt.err (!%p1093_p6)
}
 0x2fd   : > { %s1237_s1 = smov 4   ;;  %s1701_s30 = smov 64   ;;  %v568_v47 = vpop.permute.xlu0 %567 }
 0x2fe   : > { %s1702_s3 = scalar_lea.sflag [#allocation4], %s1461_s20  ;;  %s1567_s12 = scalar_lea.hbm %s1670_s7, %s1511_s15  ;;  %837 = vst.msk [vmem:[%s1516_s22 + $0xc] sm:$0xf] %vm511_vm2, %v568_v47 }
 0x2ff   : > { %877 = dma.vmem_to_hbm [thread:$0]  (%p1409_p8), %s1513_s2, 256, %s1527_s21, %s1702_s3, %s1701_s30, %s1701_s30, %s1237_s1  }
 0x300   : > { %s636_s13 = sshll.u32 %s1488_s23, 4  ;;  %s1703_s20 = sand.u32 1, %s1316_s11   ;;  %s1603_s13 = int_to_ptr.vmem [resolvable:$true] %s636_s13 }
 0x301   : > { %s1574_s19 = scalar_lea.sflag [#allocation10], %s1703_s20  ;;  %s1097_s18 = scalar_lea.vmem %s1530_s25, 256 }
 0x302   : > { %p1098_p12 = scmp.ne.s32.totalorder %s1530_s25, %s1097_s18  ;;  %s1238_s4 = smov [#allocation9]  }
 0x303   : > { %s1101_s5 = sshll.u32 %s1238_s4, 4  ;;  %s1102_s5 = int_to_ptr.vmem [resolvable:$false] %s1101_s5 }
 0x304   : > { %p1099_p0 = pnand %p1098_p12, %p1409_p8  ;;  %s1103_s3 = scalar_lea.vmem %s1102_s5, 512 }
 0x305   : > { %p1104_p10 = scmp.lt.s32.totalorder %s1530_s25, %s1102_s5  ;;  %p1105_p13 = scmp.lt.s32.totalorder %s1103_s3, %s1097_s18 }
 0x306   : > { %p1100_p5 = pneg %p1099_p0 }
 0x307   : > { %p1106_p9 = por %p1105_p13, %p1104_p10 }
 0x309   : > { %p1107_p7 = pnand %p1106_p9, %p1100_p5 }
 0x30b   : > { %1110 = shalt.err (!%p1107_p7)
}
 0x30c   : > { %s1111_s11 = scalar_lea.hbm %s1567_s12, 256  ;;  %s1115_s4 = scalar_lea.hbm %s1670_s7, 512 }
 0x30d   : > { %p1112_p3 = scmp.ne.s32.totalorder %s1567_s12, %s1111_s11  ;;  %p1116_p1 = scmp.lt.u32.totalorder %s1567_s12, %s1670_s7 }
 0x30e   : > { %p1117_p4 = scmp.lt.u32.totalorder %s1115_s4, %s1111_s11  ;;  %p1119_p12 = scmp.lt.u32.totalorder %s1111_s11, %s1567_s12 }
 0x30f   : > { %p1113_p2 = pnand %p1112_p3, %p1409_p8 }
 0x310   : > { %p1118_p6 = por %p1117_p4, %p1116_p1 }
 0x311   : > { %p1114_p11 = pneg %p1113_p2 }
 0x312   : > { %p1120_p0 = por %p1119_p12, %p1118_p6 }
 0x314   : > { %p1121_p5 = pnand %p1120_p0, %p1114_p11 }
 0x316   : > { %1124 = shalt.err (!%p1121_p5)
}
 0x317   : > { %878 = dma.vmem_to_hbm [thread:$0]  (%p1409_p8), %s1530_s25, 256, %s1567_s12, %s1574_s19, %s1701_s30, %s1701_s30, %s1237_s1   ;;  %v573_v48 = vpop.permute.xlu0 %572 }
 0x318   : > { %s1609_s20 = scalar_lea.hbm %s1671_s8, %s1511_s15  ;;  %838 = vst.msk [vmem:[%s1488_s23 + $0xc] sm:$0xf] %vm511_vm2, %v573_v48  ;;  %s1125_s18 = scalar_lea.vmem %s1603_s13, 256 }
 0x319   : > { %p1126_p10 = scmp.ne.s32.totalorder %s1603_s13, %s1125_s18  ;;  %s1239_s25 = smov [#allocation11]  }
 0x31a   : > { %s1129_s12 = sshll.u32 %s1239_s25, 4  ;;  %s1130_s12 = int_to_ptr.vmem [resolvable:$false] %s1129_s12 }
 0x31b   : > { %p1127_p13 = pnand %p1126_p10, %p1409_p8  ;;  %s1131_s3 = scalar_lea.vmem %s1130_s12, 512 }
 0x31c   : > { %p1132_p7 = scmp.lt.s32.totalorder %s1603_s13, %s1130_s12  ;;  %p1133_p3 = scmp.lt.s32.totalorder %s1131_s3, %s1125_s18 }
 0x31d   : > { %p1128_p9 = pneg %p1127_p13 }
 0x31e   : > { %p1134_p2 = por %p1133_p3, %p1132_p7 }
 0x320   : > { %p1135_p11 = pnand %p1134_p2, %p1128_p9 }
 0x322   : > { %1138 = shalt.err (!%p1135_p11)
}
 0x323   : > { %s1139_s23 = scalar_lea.hbm %s1609_s20, 256  ;;  %s1143_s2 = scalar_lea.hbm %s1671_s8, 512 }
 0x324   : > { %p1140_p1 = scmp.ne.s32.totalorder %s1609_s20, %s1139_s23  ;;  %p1144_p12 = scmp.lt.u32.totalorder %s1609_s20, %s1671_s8 }
 0x325   : > { %p1145_p0 = scmp.lt.u32.totalorder %s1143_s2, %s1139_s23  ;;  %p1147_p10 = scmp.lt.u32.totalorder %s1139_s23, %s1609_s20 }
 0x326   : > { %p1141_p4 = pnand %p1140_p1, %p1409_p8 }
 0x327   : > { %p1146_p5 = por %p1145_p0, %p1144_p12 }
 0x328   : > { %p1142_p6 = pneg %p1141_p4 }
 0x329   : > { %p1148_p13 = por %p1147_p10, %p1146_p5 }
 0x32b   : > { %p1149_p9 = pnand %p1148_p13, %p1142_p6 }
 0x32d   : > { %1152 = shalt.err (!%p1149_p9)
}
 0x32e   : > { %879 = dma.vmem_to_hbm [thread:$0]  (%p1409_p8), %s1603_s13, 256, %s1609_s20, %s1574_s19, %s1701_s30, %s1701_s30, %s1237_s1  }
 0x32f PF: > { %s651_s21 = sand.u32 1, %s1195_s27   ;;  %p1704_p7 = scmp.ne.s32.totalorder %s1685_s14, 0 }
 0x330   : > { %p1705_p3 = scmp.ge.s32.totalorder %s1215_s10, 2  ;;  %s652_s5 = scalar_lea.sflag [#allocation4], %s651_s21 }
 0x332   : > { %p895_p2 = pnand %p1705_p3, %p1704_p7 }
 0x334   : > { %1186 = dma.done.wait (!%p895_p2), %s652_s5, 256  }
 0x335   : > { %1188 = vsyncadd (!%p895_p2), %s652_s5, 4294967040  ;;  %s1706_s26 = sadd.s32 4294967294, %s1215_s10  }
 0x336   : > { %s660_s0 = sand.u32 1, %s1706_s26  }
 0x337   : > { %s661_s16 = scalar_lea.sflag [#allocation10], %s660_s0 }
 0x338   : > { %1190 = dma.done.wait (!%p895_p2), %s661_s16, 512  }
 0x339   : > { %1192 = vsyncadd (!%p895_p2), %s661_s16, 4294966784  ;;  %s29_s10 = sadd.s32 1, %s1215_s10   ;;  %s1707_s27 = smov %s1199_s28 }
 0x33a   : > { %p26_p8 = scmp.ge.s32.totalorder %s29_s10, 4   ;;  %s1708_s28 = smov %s1203_s29 }
 0x33b   : > { %s1709_s29 = smov %s1418_s17  ;;  %s1710_s30 = smov %s1211_s9 }
 0x33c   : > { %s1711_s9 = smov %s1713_s24  ;;  %28 = sbr.rel (!%p26_p8) target bundleno = 16 (0x10), region = 139 }
 0x343   :  { %675 = vsyncpa [#allocation3], 1 }
 0x344   :  { %677 = vsyncpa [#allocation3 + $0x1], 1 }
 0x345   :  { %678 = vsyncpa [#allocation6], 1 }
 0x346   :  { %679 = vsyncpa [#allocation4], 1 }
 0x347   :  { %681 = vsyncpa [#allocation4 + $0x1], 1 }
 0x348   :  { %682 = vsyncpa [#allocation10], 1 }
 0x349   :  { %684 = vsyncpa [#allocation10 + $0x1], 1 }

</bundles_post_ra>
